<compile_context>
chip_gen: v6e
topology: v6e:2x2x1
jax: 0.10.0
libtpu: 0.0.40
codegen_flags: <defaults>
</compile_context>

<pallas_src>
import math
import functools

import jax
import jax.numpy as jnp
import numpy as np
from jax import lax
from jax.experimental import pallas as pl
from jax.experimental.pallas import tpu as pltpu


# ---------------------------------------------------------------------------
# Fused Pallas kernel: one batch element per grid step, all heads inside.
# ---------------------------------------------------------------------------

def _mha_fused_kernel(q_ref, k_ref, v_ref,
                      wq_ref, wk_ref, wv_ref, wo_ref,
                      bq_ref, bk_ref, bv_ref, bo_ref,
                      out_ref, attnw_ref, *, num_heads, scale):
    # Contract the LAST dim of both operands (x @ W^T without transposing W).
    dn = (((1,), (1,)), ((), ()))

    # ---- input projections for this batch element -------------------------
    q = lax.dot_general(q_ref[0], wq_ref[...], dn,
                        preferred_element_type=jnp.float32) + bq_ref[...]   # (L, E)
    k = lax.dot_general(k_ref[0], wk_ref[...], dn,
                        preferred_element_type=jnp.float32) + bk_ref[...]   # (S, E)
    v = lax.dot_general(v_ref[0], wv_ref[...], dn,
                        preferred_element_type=jnp.float32) + bv_ref[...]   # (S, E)

    L, E = q.shape
    S = k.shape[0]
    hd = E // num_heads

    # ---- per-head scaled dot-product attention (heads unrolled) ------------
    w_acc = jnp.zeros((L, S), jnp.float32)
    ctx_parts = []
    for h in range(num_heads):
        sl = slice(h * hd, (h + 1) * hd)
        qh = q[:, sl] * scale                                   # (L, hd)
        kh = k[:, sl]                                           # (S, hd)
        vh = v[:, sl]                                           # (S, hd)

        s = lax.dot_general(qh, kh, dn,
                            preferred_element_type=jnp.float32)  # (L, S) = Q Kᵀ
        m = jnp.max(s, axis=-1, keepdims=True)
        e = jnp.exp(s - m)
        p = e / jnp.sum(e, axis=-1, keepdims=True)               # softmax probs

        w_acc = w_acc + p
        ctx_parts.append(jnp.dot(p, vh,
                                 preferred_element_type=jnp.float32))  # (L, hd)

    ctx = jnp.concatenate(ctx_parts, axis=-1)                    # (L, E)

    # ---- output projection --------------------------------------------------
    out = lax.dot_general(ctx, wo_ref[...], dn,
                          preferred_element_type=jnp.float32) + bo_ref[...]

    out_ref[0] = out.astype(out_ref.dtype)
    attnw_ref[0] = (w_acc * (1.0 / num_heads)).astype(attnw_ref.dtype)


# ---------------------------------------------------------------------------
# Multihead attention forward
# ---------------------------------------------------------------------------

def multihead_attention_forward(query, key, value, params, num_heads):
    """query: (L, N, E), key/value: (S, N, E) -> ((L, N, E), (N, L, S))."""
    L, N, E = query.shape
    S = key.shape[0]
    hd = E // num_heads
    scale = 1.0 / math.sqrt(hd)

    in_w = params["in_proj_weight"]      # (3E, E)
    in_b = params["in_proj_bias"]        # (3E,)
    wq, wk, wv = in_w[:E], in_w[E:2 * E], in_w[2 * E:]
    bq = in_b[:E].reshape(1, E)
    bk = in_b[E:2 * E].reshape(1, E)
    bv = in_b[2 * E:].reshape(1, E)
    wo = params["out_proj_weight"]       # (E, E)
    bo = params["out_proj_bias"].reshape(1, E)

    # Batch-first layout for the kernel grid; embedding stays minor (lane-dense).
    qb = query.transpose(1, 0, 2)        # (N, L, E)
    kb = key.transpose(1, 0, 2)          # (N, S, E)
    vb = value.transpose(1, 0, 2)        # (N, S, E)

    kernel = functools.partial(_mha_fused_kernel, num_heads=num_heads, scale=scale)

    def resident(shape):                 # weights/biases stay in VMEM across steps
        return pl.BlockSpec(shape, lambda n: (0, 0))

    out_b, attn_w = pl.pallas_call(
        kernel,
        out_shape=(
            jax.ShapeDtypeStruct((N, L, E), jnp.float32),
            jax.ShapeDtypeStruct((N, L, S), jnp.float32),
        ),
        grid=(N,),
        in_specs=[
            pl.BlockSpec((1, L, E), lambda n: (n, 0, 0)),   # q (this batch)
            pl.BlockSpec((1, S, E), lambda n: (n, 0, 0)),   # k
            pl.BlockSpec((1, S, E), lambda n: (n, 0, 0)),   # v
            resident((E, E)), resident((E, E)), resident((E, E)), resident((E, E)),
            resident((1, E)), resident((1, E)), resident((1, E)), resident((1, E)),
        ],
        out_specs=(
            pl.BlockSpec((1, L, E), lambda n: (n, 0, 0)),
            pl.BlockSpec((1, L, S), lambda n: (n, 0, 0)),
        ),
        compiler_params=pltpu.CompilerParams(
            dimension_semantics=("parallel",),
        ),
    )(qb, kb, vb, wq, wk, wv, wo, bq, bk, bv, bo)

    attn_out = out_b.transpose(1, 0, 2)  # (L, N, E)
    return attn_out, attn_w


# ---------------------------------------------------------------------------
# Pure-JAX reference (for correctness check)
# ---------------------------------------------------------------------------

def reference_forward(query, key, value, params, num_heads):
    with jax.default_matmul_precision("float32"):
        L, N, E = query.shape
        S = key.shape[0]
        hd = E // num_heads
        in_w, in_b = params["in_proj_weight"], params["in_proj_bias"]
        out_w, out_b = params["out_proj_weight"], params["out_proj_bias"]

        wq, wk, wv = in_w[:E], in_w[E:2 * E], in_w[2 * E:]
        bq, bk, bv = in_b[:E], in_b[E:2 * E], in_b[2 * E:]

        q = (query @ wq.T + bq) * (hd ** -0.5)
        k = key @ wk.T + bk
        v = value @ wv.T + bv

        q = q.reshape(L, N * num_heads, hd).transpose(1, 0, 2)
        k = k.reshape(S, N * num_heads, hd).transpose(1, 0, 2)
        v = v.reshape(S, N * num_heads, hd).transpose(1, 0, 2)

        scores = jnp.einsum("bld,bsd->bls", q, k)
        attn = jax.nn.softmax(scores, axis=-1)
        out = jnp.einsum("bls,bsd->bld", attn, v)

        out = out.transpose(1, 0, 2).reshape(L, N, E)
        out = out @ out_w.T + out_b
        weights = attn.reshape(N, num_heads, L, S).sum(axis=1) / num_heads
        return out, weights


# ---------------------------------------------------------------------------
# Deterministic parameter init (matches the shapes in __init__)
# ---------------------------------------------------------------------------

def init_params(key, embed_dim):
    k1, k2 = jax.random.split(key)
    # xavier_uniform_ on (3E, E): fan_in = E, fan_out = 3E
    bound_in = math.sqrt(6.0 / (embed_dim + 3 * embed_dim))
    in_proj_weight = jax.random.uniform(
        k1, (3 * embed_dim, embed_dim), jnp.float32, -bound_in, bound_in)
    # _LinearWithBias default (kaiming_uniform a=sqrt(5)) -> bound = 1/sqrt(fan_in)
    bound_out = 1.0 / math.sqrt(embed_dim)
    out_proj_weight = jax.random.uniform(
        k2, (embed_dim, embed_dim), jnp.float32, -bound_out, bound_out)
    return {
        "in_proj_weight": in_proj_weight,
        "in_proj_bias": jnp.zeros((3 * embed_dim,), jnp.float32),   # constant_(0.)
        "out_proj_weight": out_proj_weight,
        "out_proj_bias": jnp.zeros((embed_dim,), jnp.float32),      # constant_(0.)
    }


# ---------------------------------------------------------------------------
# Main
# ---------------------------------------------------------------------------

if __name__ == "__main__":
    L, S, N, E, H = 8, 8, 2, 32, 4

    root = jax.random.PRNGKey(0)
    kq, kk, kv, kp = jax.random.split(root, 4)
    query = jax.random.normal(kq, (L, N, E), jnp.float32)
    key_t = jax.random.normal(kk, (S, N, E), jnp.float32)
    value = jax.random.normal(kv, (S, N, E), jnp.float32)
    params = init_params(kp, E)

    attn_out, attn_w = multihead_attention_forward(query, key_t, value, params, H)
    attn_out = jax.block_until_ready(attn_out)
    attn_w = jax.block_until_ready(attn_w)

    ref_out, ref_w = reference_forward(query, key_t, value, params, H)

    assert attn_out.shape == (L, N, E)
    assert attn_w.shape == (N, L, S)
    np.testing.assert_allclose(np.asarray(attn_out), np.asarray(ref_out),
                               rtol=1e-5, atol=1e-5)
    np.testing.assert_allclose(np.asarray(attn_w), np.asarray(ref_w),
                               rtol=1e-5, atol=1e-5)

    print("KERNEL_OK")
</pallas_src>

<mosaic_0001>
module attributes {stable_mosaic.version = 11 : i64} {
  func.func @_mha_fused_kernel(%arg0: i32, %arg1: memref<1x8x32xf32, #tpu.memory_space<vmem>>, %arg2: memref<1x8x32xf32, #tpu.memory_space<vmem>>, %arg3: memref<1x8x32xf32, #tpu.memory_space<vmem>>, %arg4: memref<32x32xf32, #tpu.memory_space<vmem>>, %arg5: memref<32x32xf32, #tpu.memory_space<vmem>>, %arg6: memref<32x32xf32, #tpu.memory_space<vmem>>, %arg7: memref<32x32xf32, #tpu.memory_space<vmem>>, %arg8: memref<1x32xf32, #tpu.memory_space<vmem>>, %arg9: memref<1x32xf32, #tpu.memory_space<vmem>>, %arg10: memref<1x32xf32, #tpu.memory_space<vmem>>, %arg11: memref<1x32xf32, #tpu.memory_space<vmem>>, %arg12: memref<1x8x32xf32, #tpu.memory_space<vmem>>, %arg13: memref<1x8x8xf32, #tpu.memory_space<vmem>>) attributes {dimension_semantics = [#tpu.dimension_semantics<parallel>], iteration_bounds = array<i64: 2>, scalar_prefetch = 0 : i64, scratch_operands = 0 : i64, tpu.core_type = #tpu.core_type<tc>, window_params = [{transform_indices = @transform_0, window_bounds = array<i64: 1, 8, 32>}, {transform_indices = @transform_1, window_bounds = array<i64: 1, 8, 32>}, {transform_indices = @transform_2, window_bounds = array<i64: 1, 8, 32>}, {pipeline_mode = #tpu.pipeline_mode<synchronous>, transform_indices = @transform_3, window_bounds = array<i64: 32, 32>}, {pipeline_mode = #tpu.pipeline_mode<synchronous>, transform_indices = @transform_4, window_bounds = array<i64: 32, 32>}, {pipeline_mode = #tpu.pipeline_mode<synchronous>, transform_indices = @transform_5, window_bounds = array<i64: 32, 32>}, {pipeline_mode = #tpu.pipeline_mode<synchronous>, transform_indices = @transform_6, window_bounds = array<i64: 32, 32>}, {pipeline_mode = #tpu.pipeline_mode<synchronous>, transform_indices = @transform_7, window_bounds = array<i64: 1, 32>}, {pipeline_mode = #tpu.pipeline_mode<synchronous>, transform_indices = @transform_8, window_bounds = array<i64: 1, 32>}, {pipeline_mode = #tpu.pipeline_mode<synchronous>, transform_indices = @transform_9, window_bounds = array<i64: 1, 32>}, {pipeline_mode = #tpu.pipeline_mode<synchronous>, transform_indices = @transform_10, window_bounds = array<i64: 1, 32>}, {transform_indices = @transform_11, window_bounds = array<i64: 1, 8, 32>}, {transform_indices = @transform_12, window_bounds = array<i64: 1, 8, 8>}]} {
    %c0 = arith.constant 0 : index
    %c0_0 = arith.constant 0 : index
    %c0_1 = arith.constant 0 : index
    %0 = vector.load %arg1[%c0, %c0_0, %c0_1] : memref<1x8x32xf32, #tpu.memory_space<vmem>>, vector<1x8x32xf32>
    %1 = vector.shape_cast %0 : vector<1x8x32xf32> to vector<8x32xf32>
    %c0_2 = arith.constant 0 : index
    %c0_3 = arith.constant 0 : index
    %2 = vector.load %arg4[%c0_2, %c0_3] : memref<32x32xf32, #tpu.memory_space<vmem>>, vector<32x32xf32>
    %cst = arith.constant dense<0.000000e+00> : vector<8x32xf32>
    %3 = tpu.matmul %1, %2, %cst {dimension_numbers = #tpu.dot_dimension_numbers<[1], [1], [0], [0], [0, 0, 1, 0], [], []>} : vector<8x32xf32>, vector<32x32xf32>, vector<8x32xf32> -> vector<8x32xf32>
    %c0_4 = arith.constant 0 : index
    %c0_5 = arith.constant 0 : index
    %4 = vector.load %arg8[%c0_4, %c0_5] : memref<1x32xf32, #tpu.memory_space<vmem>>, vector<1x32xf32>
    %5 = vector.broadcast %4 : vector<1x32xf32> to vector<8x32xf32>
    %6 = arith.addf %3, %5 : vector<8x32xf32>
    %c0_6 = arith.constant 0 : index
    %c0_7 = arith.constant 0 : index
    %c0_8 = arith.constant 0 : index
    %7 = vector.load %arg2[%c0_6, %c0_7, %c0_8] : memref<1x8x32xf32, #tpu.memory_space<vmem>>, vector<1x8x32xf32>
    %8 = vector.shape_cast %7 : vector<1x8x32xf32> to vector<8x32xf32>
    %c0_9 = arith.constant 0 : index
    %c0_10 = arith.constant 0 : index
    %9 = vector.load %arg5[%c0_9, %c0_10] : memref<32x32xf32, #tpu.memory_space<vmem>>, vector<32x32xf32>
    %cst_11 = arith.constant dense<0.000000e+00> : vector<8x32xf32>
    %10 = tpu.matmul %8, %9, %cst_11 {dimension_numbers = #tpu.dot_dimension_numbers<[1], [1], [0], [0], [0, 0, 1, 0], [], []>} : vector<8x32xf32>, vector<32x32xf32>, vector<8x32xf32> -> vector<8x32xf32>
    %c0_12 = arith.constant 0 : index
    %c0_13 = arith.constant 0 : index
    %11 = vector.load %arg9[%c0_12, %c0_13] : memref<1x32xf32, #tpu.memory_space<vmem>>, vector<1x32xf32>
    %12 = vector.broadcast %11 : vector<1x32xf32> to vector<8x32xf32>
    %13 = arith.addf %10, %12 : vector<8x32xf32>
    %c0_14 = arith.constant 0 : index
    %c0_15 = arith.constant 0 : index
    %c0_16 = arith.constant 0 : index
    %14 = vector.load %arg3[%c0_14, %c0_15, %c0_16] : memref<1x8x32xf32, #tpu.memory_space<vmem>>, vector<1x8x32xf32>
    %15 = vector.shape_cast %14 : vector<1x8x32xf32> to vector<8x32xf32>
    %c0_17 = arith.constant 0 : index
    %c0_18 = arith.constant 0 : index
    %16 = vector.load %arg6[%c0_17, %c0_18] : memref<32x32xf32, #tpu.memory_space<vmem>>, vector<32x32xf32>
    %cst_19 = arith.constant dense<0.000000e+00> : vector<8x32xf32>
    %17 = tpu.matmul %15, %16, %cst_19 {dimension_numbers = #tpu.dot_dimension_numbers<[1], [1], [0], [0], [0, 0, 1, 0], [], []>} : vector<8x32xf32>, vector<32x32xf32>, vector<8x32xf32> -> vector<8x32xf32>
    %c0_20 = arith.constant 0 : index
    %c0_21 = arith.constant 0 : index
    %18 = vector.load %arg10[%c0_20, %c0_21] : memref<1x32xf32, #tpu.memory_space<vmem>>, vector<1x32xf32>
    %19 = vector.broadcast %18 : vector<1x32xf32> to vector<8x32xf32>
    %20 = arith.addf %17, %19 : vector<8x32xf32>
    %cst_22 = arith.constant 0.000000e+00 : f32
    %21 = vector.broadcast %cst_22 : f32 to vector<8x8xf32>
    %22 = vector.extract_strided_slice %6 {offsets = [0, 0], sizes = [8, 8], strides = [1, 1]} : vector<8x32xf32> to vector<8x8xf32>
    %cst_23 = arith.constant 0.353553385 : f32
    %23 = vector.broadcast %cst_23 : f32 to vector<8x8xf32>
    %24 = arith.mulf %22, %23 : vector<8x8xf32>
    %25 = vector.extract_strided_slice %13 {offsets = [0, 0], sizes = [8, 8], strides = [1, 1]} : vector<8x32xf32> to vector<8x8xf32>
    %26 = vector.extract_strided_slice %20 {offsets = [0, 0], sizes = [8, 8], strides = [1, 1]} : vector<8x32xf32> to vector<8x8xf32>
    %cst_24 = arith.constant dense<0.000000e+00> : vector<8x8xf32>
    %27 = tpu.matmul %24, %25, %cst_24 {dimension_numbers = #tpu.dot_dimension_numbers<[1], [1], [0], [0], [0, 0, 1, 0], [], []>} : vector<8x8xf32>, vector<8x8xf32>, vector<8x8xf32> -> vector<8x8xf32>
    %cst_25 = arith.constant dense<0xFF800000> : vector<8xf32>
    %28 = vector.multi_reduction <maximumf>, %27, %cst_25 [1] : vector<8x8xf32> to vector<8xf32>
    %29 = vector.shape_cast %28 : vector<8xf32> to vector<8x1xf32>
    %30 = vector.broadcast %29 : vector<8x1xf32> to vector<8x8xf32>
    %31 = arith.subf %27, %30 : vector<8x8xf32>
    %32 = math.exp %31 : vector<8x8xf32>
    %cst_26 = arith.constant dense<0.000000e+00> : vector<8xf32>
    %33 = vector.multi_reduction <add>, %32, %cst_26 [1] : vector<8x8xf32> to vector<8xf32>
    %34 = vector.shape_cast %33 : vector<8xf32> to vector<8x1xf32>
    %35 = vector.broadcast %34 : vector<8x1xf32> to vector<8x8xf32>
    %36 = arith.divf %32, %35 : vector<8x8xf32>
    %37 = arith.addf %21, %36 : vector<8x8xf32>
    %cst_27 = arith.constant dense<0.000000e+00> : vector<8x8xf32>
    %38 = tpu.matmul %36, %26, %cst_27 {dimension_numbers = #tpu.dot_dimension_numbers<[1], [0], [0], [1], [0, 0, 1, 1], [], []>} : vector<8x8xf32>, vector<8x8xf32>, vector<8x8xf32> -> vector<8x8xf32>
    %39 = vector.extract_strided_slice %6 {offsets = [0, 8], sizes = [8, 8], strides = [1, 1]} : vector<8x32xf32> to vector<8x8xf32>
    %cst_28 = arith.constant 0.353553385 : f32
    %40 = vector.broadcast %cst_28 : f32 to vector<8x8xf32>
    %41 = arith.mulf %39, %40 : vector<8x8xf32>
    %42 = vector.extract_strided_slice %13 {offsets = [0, 8], sizes = [8, 8], strides = [1, 1]} : vector<8x32xf32> to vector<8x8xf32>
    %43 = vector.extract_strided_slice %20 {offsets = [0, 8], sizes = [8, 8], strides = [1, 1]} : vector<8x32xf32> to vector<8x8xf32>
    %cst_29 = arith.constant dense<0.000000e+00> : vector<8x8xf32>
    %44 = tpu.matmul %41, %42, %cst_29 {dimension_numbers = #tpu.dot_dimension_numbers<[1], [1], [0], [0], [0, 0, 1, 0], [], []>} : vector<8x8xf32>, vector<8x8xf32>, vector<8x8xf32> -> vector<8x8xf32>
    %cst_30 = arith.constant dense<0xFF800000> : vector<8xf32>
    %45 = vector.multi_reduction <maximumf>, %44, %cst_30 [1] : vector<8x8xf32> to vector<8xf32>
    %46 = vector.shape_cast %45 : vector<8xf32> to vector<8x1xf32>
    %47 = vector.broadcast %46 : vector<8x1xf32> to vector<8x8xf32>
    %48 = arith.subf %44, %47 : vector<8x8xf32>
    %49 = math.exp %48 : vector<8x8xf32>
    %cst_31 = arith.constant dense<0.000000e+00> : vector<8xf32>
    %50 = vector.multi_reduction <add>, %49, %cst_31 [1] : vector<8x8xf32> to vector<8xf32>
    %51 = vector.shape_cast %50 : vector<8xf32> to vector<8x1xf32>
    %52 = vector.broadcast %51 : vector<8x1xf32> to vector<8x8xf32>
    %53 = arith.divf %49, %52 : vector<8x8xf32>
    %54 = arith.addf %37, %53 : vector<8x8xf32>
    %cst_32 = arith.constant dense<0.000000e+00> : vector<8x8xf32>
    %55 = tpu.matmul %53, %43, %cst_32 {dimension_numbers = #tpu.dot_dimension_numbers<[1], [0], [0], [1], [0, 0, 1, 1], [], []>} : vector<8x8xf32>, vector<8x8xf32>, vector<8x8xf32> -> vector<8x8xf32>
    %56 = vector.extract_strided_slice %6 {offsets = [0, 16], sizes = [8, 8], strides = [1, 1]} : vector<8x32xf32> to vector<8x8xf32>
    %cst_33 = arith.constant 0.353553385 : f32
    %57 = vector.broadcast %cst_33 : f32 to vector<8x8xf32>
    %58 = arith.mulf %56, %57 : vector<8x8xf32>
    %59 = vector.extract_strided_slice %13 {offsets = [0, 16], sizes = [8, 8], strides = [1, 1]} : vector<8x32xf32> to vector<8x8xf32>
    %60 = vector.extract_strided_slice %20 {offsets = [0, 16], sizes = [8, 8], strides = [1, 1]} : vector<8x32xf32> to vector<8x8xf32>
    %cst_34 = arith.constant dense<0.000000e+00> : vector<8x8xf32>
    %61 = tpu.matmul %58, %59, %cst_34 {dimension_numbers = #tpu.dot_dimension_numbers<[1], [1], [0], [0], [0, 0, 1, 0], [], []>} : vector<8x8xf32>, vector<8x8xf32>, vector<8x8xf32> -> vector<8x8xf32>
    %cst_35 = arith.constant dense<0xFF800000> : vector<8xf32>
    %62 = vector.multi_reduction <maximumf>, %61, %cst_35 [1] : vector<8x8xf32> to vector<8xf32>
    %63 = vector.shape_cast %62 : vector<8xf32> to vector<8x1xf32>
    %64 = vector.broadcast %63 : vector<8x1xf32> to vector<8x8xf32>
    %65 = arith.subf %61, %64 : vector<8x8xf32>
    %66 = math.exp %65 : vector<8x8xf32>
    %cst_36 = arith.constant dense<0.000000e+00> : vector<8xf32>
    %67 = vector.multi_reduction <add>, %66, %cst_36 [1] : vector<8x8xf32> to vector<8xf32>
    %68 = vector.shape_cast %67 : vector<8xf32> to vector<8x1xf32>
    %69 = vector.broadcast %68 : vector<8x1xf32> to vector<8x8xf32>
    %70 = arith.divf %66, %69 : vector<8x8xf32>
    %71 = arith.addf %54, %70 : vector<8x8xf32>
    %cst_37 = arith.constant dense<0.000000e+00> : vector<8x8xf32>
    %72 = tpu.matmul %70, %60, %cst_37 {dimension_numbers = #tpu.dot_dimension_numbers<[1], [0], [0], [1], [0, 0, 1, 1], [], []>} : vector<8x8xf32>, vector<8x8xf32>, vector<8x8xf32> -> vector<8x8xf32>
    %73 = vector.extract_strided_slice %6 {offsets = [0, 24], sizes = [8, 8], strides = [1, 1]} : vector<8x32xf32> to vector<8x8xf32>
    %cst_38 = arith.constant 0.353553385 : f32
    %74 = vector.broadcast %cst_38 : f32 to vector<8x8xf32>
    %75 = arith.mulf %73, %74 : vector<8x8xf32>
    %76 = vector.extract_strided_slice %13 {offsets = [0, 24], sizes = [8, 8], strides = [1, 1]} : vector<8x32xf32> to vector<8x8xf32>
    %77 = vector.extract_strided_slice %20 {offsets = [0, 24], sizes = [8, 8], strides = [1, 1]} : vector<8x32xf32> to vector<8x8xf32>
    %cst_39 = arith.constant dense<0.000000e+00> : vector<8x8xf32>
    %78 = tpu.matmul %75, %76, %cst_39 {dimension_numbers = #tpu.dot_dimension_numbers<[1], [1], [0], [0], [0, 0, 1, 0], [], []>} : vector<8x8xf32>, vector<8x8xf32>, vector<8x8xf32> -> vector<8x8xf32>
    %cst_40 = arith.constant dense<0xFF800000> : vector<8xf32>
    %79 = vector.multi_reduction <maximumf>, %78, %cst_40 [1] : vector<8x8xf32> to vector<8xf32>
    %80 = vector.shape_cast %79 : vector<8xf32> to vector<8x1xf32>
    %81 = vector.broadcast %80 : vector<8x1xf32> to vector<8x8xf32>
    %82 = arith.subf %78, %81 : vector<8x8xf32>
    %83 = math.exp %82 : vector<8x8xf32>
    %cst_41 = arith.constant dense<0.000000e+00> : vector<8xf32>
    %84 = vector.multi_reduction <add>, %83, %cst_41 [1] : vector<8x8xf32> to vector<8xf32>
    %85 = vector.shape_cast %84 : vector<8xf32> to vector<8x1xf32>
    %86 = vector.broadcast %85 : vector<8x1xf32> to vector<8x8xf32>
    %87 = arith.divf %83, %86 : vector<8x8xf32>
    %88 = arith.addf %71, %87 : vector<8x8xf32>
    %cst_42 = arith.constant dense<0.000000e+00> : vector<8x8xf32>
    %89 = tpu.matmul %87, %77, %cst_42 {dimension_numbers = #tpu.dot_dimension_numbers<[1], [0], [0], [1], [0, 0, 1, 1], [], []>} : vector<8x8xf32>, vector<8x8xf32>, vector<8x8xf32> -> vector<8x8xf32>
    %90 = tpu.concatenate %38, %55, %72, %89 in 1 : vector<8x8xf32>, vector<8x8xf32>, vector<8x8xf32>, vector<8x8xf32> -> vector<8x32xf32>
    %c0_43 = arith.constant 0 : index
    %c0_44 = arith.constant 0 : index
    %91 = vector.load %arg7[%c0_43, %c0_44] : memref<32x32xf32, #tpu.memory_space<vmem>>, vector<32x32xf32>
    %cst_45 = arith.constant dense<0.000000e+00> : vector<8x32xf32>
    %92 = tpu.matmul %90, %91, %cst_45 {dimension_numbers = #tpu.dot_dimension_numbers<[1], [1], [0], [0], [0, 0, 1, 0], [], []>} : vector<8x32xf32>, vector<32x32xf32>, vector<8x32xf32> -> vector<8x32xf32>
    %c0_46 = arith.constant 0 : index
    %c0_47 = arith.constant 0 : index
    %93 = vector.load %arg11[%c0_46, %c0_47] : memref<1x32xf32, #tpu.memory_space<vmem>>, vector<1x32xf32>
    %94 = vector.broadcast %93 : vector<1x32xf32> to vector<8x32xf32>
    %95 = arith.addf %92, %94 : vector<8x32xf32>
    %c0_48 = arith.constant 0 : index
    %c0_49 = arith.constant 0 : index
    %c0_50 = arith.constant 0 : index
    %96 = vector.load %arg12[%c0_48, %c0_49, %c0_50] : memref<1x8x32xf32, #tpu.memory_space<vmem>>, vector<1x8x32xf32>
    %97 = vector.shape_cast %96 : vector<1x8x32xf32> to vector<8x32xf32>
    %98 = vector.shape_cast %95 : vector<8x32xf32> to vector<1x8x32xf32>
    tpu.vector_store %arg12[%c0_48, %c0_49, %c0_50], %98 {strides = array<i32>} : memref<1x8x32xf32, #tpu.memory_space<vmem>>, vector<1x8x32xf32>,
    %cst_51 = arith.constant 2.500000e-01 : f32
    %99 = vector.broadcast %cst_51 : f32 to vector<8x8xf32>
    %100 = arith.mulf %88, %99 : vector<8x8xf32>
    %c0_52 = arith.constant 0 : index
    %c0_53 = arith.constant 0 : index
    %c0_54 = arith.constant 0 : index
    %101 = vector.load %arg13[%c0_52, %c0_53, %c0_54] : memref<1x8x8xf32, #tpu.memory_space<vmem>>, vector<1x8x8xf32>
    %102 = vector.shape_cast %101 : vector<1x8x8xf32> to vector<8x8xf32>
    %103 = vector.shape_cast %100 : vector<8x8xf32> to vector<1x8x8xf32>
    tpu.vector_store %arg13[%c0_52, %c0_53, %c0_54], %103 {strides = array<i32>} : memref<1x8x8xf32, #tpu.memory_space<vmem>>, vector<1x8x8xf32>,
    return
  }
  func.func @transform_0(%arg0: i32) -> (i32, i32, i32) {
    %c0_i32 = arith.constant 0 : i32
    %c0_i32_0 = arith.constant 0 : i32
    %c0_i32_1 = arith.constant 0 : i32
    return %arg0, %c0_i32, %c0_i32_0 : i32, i32, i32
  }
  func.func @transform_1(%arg0: i32) -> (i32, i32, i32) {
    %c0_i32 = arith.constant 0 : i32
    %c0_i32_0 = arith.constant 0 : i32
    %c0_i32_1 = arith.constant 0 : i32
    return %arg0, %c0_i32, %c0_i32_0 : i32, i32, i32
  }
  func.func @transform_2(%arg0: i32) -> (i32, i32, i32) {
    %c0_i32 = arith.constant 0 : i32
    %c0_i32_0 = arith.constant 0 : i32
    %c0_i32_1 = arith.constant 0 : i32
    return %arg0, %c0_i32, %c0_i32_0 : i32, i32, i32
  }
  func.func @transform_3(%arg0: i32) -> (i32, i32) {
    %c0_i32 = arith.constant 0 : i32
    %c0_i32_0 = arith.constant 0 : i32
    %c0_i32_1 = arith.constant 0 : i32
    return %c0_i32, %c0_i32_0 : i32, i32
  }
  func.func @transform_4(%arg0: i32) -> (i32, i32) {
    %c0_i32 = arith.constant 0 : i32
    %c0_i32_0 = arith.constant 0 : i32
    %c0_i32_1 = arith.constant 0 : i32
    return %c0_i32, %c0_i32_0 : i32, i32
  }
  func.func @transform_5(%arg0: i32) -> (i32, i32) {
    %c0_i32 = arith.constant 0 : i32
    %c0_i32_0 = arith.constant 0 : i32
    %c0_i32_1 = arith.constant 0 : i32
    return %c0_i32, %c0_i32_0 : i32, i32
  }
  func.func @transform_6(%arg0: i32) -> (i32, i32) {
    %c0_i32 = arith.constant 0 : i32
    %c0_i32_0 = arith.constant 0 : i32
    %c0_i32_1 = arith.constant 0 : i32
    return %c0_i32, %c0_i32_0 : i32, i32
  }
  func.func @transform_7(%arg0: i32) -> (i32, i32) {
    %c0_i32 = arith.constant 0 : i32
    %c0_i32_0 = arith.constant 0 : i32
    %c0_i32_1 = arith.constant 0 : i32
    return %c0_i32, %c0_i32_0 : i32, i32
  }
  func.func @transform_8(%arg0: i32) -> (i32, i32) {
    %c0_i32 = arith.constant 0 : i32
    %c0_i32_0 = arith.constant 0 : i32
    %c0_i32_1 = arith.constant 0 : i32
    return %c0_i32, %c0_i32_0 : i32, i32
  }
  func.func @transform_9(%arg0: i32) -> (i32, i32) {
    %c0_i32 = arith.constant 0 : i32
    %c0_i32_0 = arith.constant 0 : i32
    %c0_i32_1 = arith.constant 0 : i32
    return %c0_i32, %c0_i32_0 : i32, i32
  }
  func.func @transform_10(%arg0: i32) -> (i32, i32) {
    %c0_i32 = arith.constant 0 : i32
    %c0_i32_0 = arith.constant 0 : i32
    %c0_i32_1 = arith.constant 0 : i32
    return %c0_i32, %c0_i32_0 : i32, i32
  }
  func.func @transform_11(%arg0: i32) -> (i32, i32, i32) {
    %c0_i32 = arith.constant 0 : i32
    %c0_i32_0 = arith.constant 0 : i32
    %c0_i32_1 = arith.constant 0 : i32
    return %arg0, %c0_i32, %c0_i32_0 : i32, i32, i32
  }
  func.func @transform_12(%arg0: i32) -> (i32, i32, i32) {
    %c0_i32 = arith.constant 0 : i32
    %c0_i32_0 = arith.constant 0 : i32
    %c0_i32_1 = arith.constant 0 : i32
    return %arg0, %c0_i32, %c0_i32_0 : i32, i32, i32
  }
}

</mosaic_0001>

<bundles_post_ra>
// kernel: tpu_custom_call.1
= control target key start
LH: loop header
LB: loop body
LE: loop exit
PB: predicated region body
PF: predicated region fallthrough
CT: control target
= control target key end

     0   :  { %s2989_s0 = inlined_call_operand.hbm [shape: f32[2,8,32], index: 0, kind: input, shape index: {}]   ;;  %s2990_s1 = inlined_call_operand.hbm [shape: f32[2,8,32], index: 1, kind: input, shape index: {}]   ;;  %s2991_s2 = inlined_call_operand.hbm [shape: f32[2,8,32], index: 2, kind: input, shape index: {}]   ;;  %s2992_s3 = inlined_call_operand.hbm [shape: f32[32,32], index: 3, kind: input, shape index: {}]   ;;  %s2993_s4 = inlined_call_operand.hbm [shape: f32[32,32], index: 4, kind: input, shape index: {}]   ;;  %s2994_s5 = inlined_call_operand.hbm [shape: f32[32,32], index: 5, kind: input, shape index: {}]   ;;  %s2995_s6 = inlined_call_operand.hbm [shape: f32[32,32], index: 6, kind: input, shape index: {}]   ;;  %s2996_s7 = inlined_call_operand.vmem [shape: f32[1,32], index: 7, kind: input, shape index: {}]   ;;  %s2997_s8 = inlined_call_operand.vmem [shape: f32[1,32], index: 8, kind: input, shape index: {}]   ;;  %s2998_s9 = inlined_call_operand.vmem [shape: f32[1,32], index: 9, kind: input, shape index: {}]   ;;  %s2999_s10 = inlined_call_operand.vmem [shape: f32[1,32], index: 10, kind: input, shape index: {}]   ;;  %s3000_s11 = inlined_call_operand.hbm [shape: f32[2,8,32], index: 11, kind: output, shape index: {0}]   ;;  %s3001_s12 = inlined_call_operand.hbm [shape: f32[2,8,8], index: 12, kind: output, shape index: {1}]  }
   0x1   :  { %3023 = sst [smem:[#allocation28_spill]] %s2989_s0 }
   0x2   :  { %3024 = sst [smem:[#allocation29_spill]] %s2990_s1 }
   0x3   :  { %3025 = sst [smem:[#allocation30_spill]] %s2992_s3 }
   0x4   :  { %3026 = sst [smem:[#allocation31_spill]] %s2994_s5 }
   0x5   :  { %3027 = sst [smem:[#allocation32_spill]] %s2999_s10 }
   0x6   :  { %3028 = sst [smem:[#allocation33_spill]] %s3000_s11 }
   0x7   :  { %3029 = sst [smem:[#allocation34_spill]] %s3001_s12 }
   0x8   :  { %18 = vsyncpa [#allocation3], 0 }
   0x9   :  { %20 = vsyncpa [#allocation3 + $0x1], 0 }
   0xa   :  { %21 = vsyncpa [#allocation6], 0 }
   0xb   :  { %23 = vsyncpa [#allocation6 + $0x1], 0 }
   0xc   :  { %24 = vsyncpa [#allocation9], 0 }
   0xd   :  { %25 = vsyncpa [#allocation12], 0 }
   0xe   :  { %26 = vsyncpa [#allocation4], 0 }
   0xf   :  { %28 = vsyncpa [#allocation4 + $0x1], 0 }
  0x10   :  { %29 = vsyncpa [#allocation16], 0 }
  0x11   :  { %31 = vsyncpa [#allocation16 + $0x1], 0  ;;  %s2547_s21 = smov 0   ;;  %s2549_s22 = smov 0  }
  0x12   :  { %s2551_s23 = smov 0   ;;  %s2553_s24 = smov 0  }
  0x13 LB: > { %3030 = sst [smem:[#allocation23_spill]] %s2449_s21  ;;  %s2463_s25 = smov [#allocation8]   ;;  %s2461_s24 = sphi %s2553_s24, %s3068_s24   ;;  %s2457_s23 = sphi %s2551_s23, %s3072_s23   ;;  %s2453_s22 = sphi %s2549_s22, %s3071_s22   ;;  %s2449_s21 = sphi %s2547_s21, %s3070_s21  }
  0x14   : > { %3031 = sst [smem:[#allocation24_spill]] %s2461_s24  ;;  %s352_s26 = sshll.u32 %s2463_s25, 4  ;;  %s353_s26 = int_to_ptr.vmem [resolvable:$true] %s352_s26 }
  0x15   : > { %s2568_s27 = sadd.s32 4294967295, %s2461_s24   ;;  %p1855_p0 = scmp.ge.s32.totalorder %s2461_s24, 1 }
  0x16   : > { %p3015_p1 = scmp.eq.s32.totalorder %s2568_s27, 0  ;;  %p340_p2 = scmp.lt.s32.totalorder %s2461_s24, 3 }
  0x17   : > { %s2464_s29 = smov [#allocation11]   ;;  %s2178_s14 = scalar_lea.vmem %s353_s26, 512 }
  0x18   : > { %p2573_p3 = pnand %p1855_p0, %p340_p2  ;;  %s378_s30 = sshll.u32 %s2464_s29, 4  ;;  %s379_s30 = int_to_ptr.vmem [resolvable:$true] %s378_s30 }
  0x19   : > { %p2179_p8 = scmp.ne.s32.totalorder %s353_s26, %s2178_s14  ;;  %p2186_p11 = scmp.lt.s32.totalorder %s353_s26, %s353_s26 }
  0x1a   : > { %s3032_s28 = scalar_select %p2573_p3, 1, 0 }
  0x1b   : > { %p2065_p5 = pneg %p2573_p3  ;;  %p2187_p12 = scmp.lt.s32.totalorder %s2178_s14, %s2178_s14 }
  0x1d   : > { %p2582_p6 = pnand %p2065_p5, %p3015_p1  ;;  %p2188_p13 = por %p2187_p12, %p2186_p11 }
  0x1f   : > { %s3033_s13 = scalar_select %p2582_p6, 1, 0 }
  0x20   : > { %p3002_p7 = pneg %p2582_p6 }
  0x22   : > { %p2181_p9 = pnand %p2179_p8, %p3002_p7 }
  0x24   : > { %p2182_p10 = pneg %p2181_p9 }
  0x26   : > { %p2189_p0 = pnand %p2188_p13, %p2182_p10 }
  0x28   : > { %2192 = shalt.err (!%p2189_p0)
}
  0x29   : > { %s3003_s15 = smov 128   ;;  %s3005_s16 = smov 8  }
  0x2a   : > { %s3034_s3 = sld [smem:[#allocation30_spill]]  ;;  %s2204_s19 = scalar_lea.vmem %s379_s30, 512 }
  0x2b   : > { %p2205_p2 = scmp.ne.s32.totalorder %s379_s30, %s2204_s19  ;;  %p2212_p9 = scmp.lt.s32.totalorder %s379_s30, %s379_s30 }
  0x2c   : > { %p2213_p10 = scmp.lt.s32.totalorder %s2204_s19, %s2204_s19 }
  0x2d   : > { %p2207_p5 = pnand %p2205_p2, %p3002_p7 }
  0x2e   : > { %p2214_p11 = por %p2213_p10, %p2212_p9 }
  0x2f   : > { %p2208_p8 = pneg %p2207_p5 }
  0x30   : > { %2068 = dma.hbm_to_vmem [thread:$0]  (!%p2582_p6), %s3034_s3, 512, %s353_s26, [#allocation9], %s3003_s15, %s3003_s15, %s3005_s16  }
  0x31   : > { %p2215_p12 = pnand %p2214_p11, %p2208_p8 }
  0x33   : > { %2218 = shalt.err (!%p2215_p12)
}
  0x34   : > { %s3035_s5 = sld [smem:[#allocation31_spill]]  ;;  %s1854_s26 = sadd.s32 4294967294, %s2461_s24  }
  0x35   : > { %s2612_s29 = sadd.s32 1, %s2461_s24   ;;  %s44_s17 = sadd.s32 1, %s2457_s23 }
  0x36   : > { %3036 = sst [smem:[#allocation25_spill]] %s2612_s29  ;;  %s41_s14 = ssub.s32 %s2461_s24, %s2612_s29 }
  0x37   : > { %p42_p13 = scmp.eq.s32.totalorder %s41_s14, 0  ;;  %p51_p0 = scmp.ne.s32.totalorder %s2457_s23, %s2453_s22 }
  0x38   : > { %p52_p2 = scmp.eq.s32.totalorder %s2461_s24, 0  ;;  %p57_p5 = scmp.ne.s32.totalorder %s2453_s22, %s2449_s21 }
  0x39   : > { %s2623_s18 = scalar_select %p42_p13, %s2457_s23, %s44_s17  }
  0x3a   : > { %2074 = dma.hbm_to_vmem [thread:$0]  (!%p2582_p6), %s3035_s5, 512, %s379_s30, [#allocation12], %s3003_s15, %s3003_s15, %s3005_s16  }
  0x3b   : > { %3037 = sst [smem:[#allocation26_spill]] %s2623_s18  ;;  %p53_p8 = por %p52_p2, %p51_p0 }
  0x3c   : > { %p2627_p9 = por %p3015_p1, %p57_p5  ;;  %p301_p10 = scmp.eq.s32.totalorder %s2568_s27, 1 }
  0x3d   : > { %p307_p11 = scmp.eq.s32.totalorder %s1854_s26, 1  ;;  %p2099_p12 = scmp.lt.s32.totalorder %s2461_s24, 2 }
  0x3e   : > { %s3038_s19 = scalar_select %p2627_p9, 1, 0 }
  0x3f   : > { %s3007_s30 = sand.u32 1, %s2457_s23   ;;  %p2634_p4 = por %p301_p10, %p51_p0 }
  0x40   : > { %p2638_p7 = por %p307_p11, %p57_p5  ;;  %s2644_s14 = sshll.u32 %s3007_s30, 3 }
  0x41   : > { %s3039_s20 = scalar_select %p2634_p4, 1, 0 }
  0x42   : > { %s3040_s25 = scalar_select %p2638_p7, 1, 0 }
  0x43   : > { %s2647_s17 = sshll.u32 %s2461_s24, 7  ;;  %p2649_p13 = pnand %p2099_p12, %p53_p8 }
  0x44   : > { %3041 = sst [smem:[#allocation27_spill]] %s3040_s25  ;;  %s435_s26 = sand.u32 1, %s2461_s24  }
  0x45   : > { %s3043_s1 = sld [smem:[#allocation29_spill]]  ;;  %s439_s30 = scalar_lea.vmem [#allocation5], %s2644_s14 }
  0x46   : > { %s446_s18 = sshll.u32 %s439_s30, 4  ;;  %s2467_s29 = smov [#allocation10]   ;;  %s2661_s18 = int_to_ptr.vmem [resolvable:$true] %s446_s18 }
  0x47   : > { %s365_s25 = sshll.u32 %s2467_s29, 4  ;;  %s2663_s21 = scalar_lea.sflag [#allocation6], %s435_s26  ;;  %s366_s25 = int_to_ptr.vmem [resolvable:$true] %s365_s25 }
  0x48   : > { %p2669_p2 = pneg %p2649_p13 }
  0x4a   : > { %s3044_s24 = scalar_select %p2669_p2, 1, 0 }
  0x4b   : > { %s2658_s5 = scalar_lea.hbm %s3043_s1, %s2647_s17  ;;  %s2224_s30 = scalar_lea.hbm %s3043_s1, 256 }
  0x4c   : > { %s2219_s11 = scalar_lea.hbm %s2658_s5, 128  ;;  %p2225_p10 = scmp.lt.s32.totalorder %s2658_s5, %s3043_s1 }
  0x4d   : > { %p2220_p0 = scmp.ne.s32.totalorder %s2658_s5, %s2219_s11  ;;  %p2226_p11 = scmp.lt.s32.totalorder %s2224_s30, %s2219_s11 }
  0x4f   : > { %p2222_p5 = pnand %p2669_p2, %p2220_p0  ;;  %p2227_p12 = por %p2226_p11, %p2225_p10 }
  0x51   : > { %p2223_p8 = pneg %p2222_p5 }
  0x53   : > { %p2228_p1 = pnand %p2227_p12, %p2223_p8 }
  0x55   : > { %2231 = shalt.err (!%p2228_p1)
}
  0x56   : > { %s2232_s29 = scalar_lea.vmem %s2661_s18, 128  ;;  %s2468_s26 = smov [#allocation5]  }
  0x57   : > { %p2233_p7 = scmp.ne.s32.totalorder %s2661_s18, %s2232_s29  ;;  %s2237_s3 = sshll.u32 %s2468_s26, 4  ;;  %s2238_s3 = int_to_ptr.vmem [resolvable:$false] %s2237_s3 }
  0x58   : > { %s2239_s16 = scalar_lea.vmem %s2238_s3, 256  ;;  %p2240_p4 = scmp.lt.s32.totalorder %s2661_s18, %s2238_s3 }
  0x59   : > { %p2235_p0 = pnand %p2233_p7, %p2669_p2  ;;  %p2241_p9 = scmp.lt.s32.totalorder %s2239_s16, %s2232_s29 }
  0x5b   : > { %p2236_p5 = pneg %p2235_p0  ;;  %p2242_p3 = por %p2241_p9, %p2240_p4 }
  0x5d   : > { %p2243_p6 = pnand %p2242_p3, %p2236_p5 }
  0x5f   : > { %2246 = shalt.err (!%p2243_p6)
}
  0x60   : > { %2084 = dma.hbm_to_vmem [thread:$0]  (!%p2649_p13), %s2658_s5, 128, %s2661_s18, %s2663_s21  }
  0x61   : > { %s2258_s10 = scalar_lea.vmem %s366_s25, 512  ;;  %p3045_p7 = scmp.ne.s32.totalorder %s3033_s13, 0 }
  0x62   : > { %p2259_p1 = scmp.ne.s32.totalorder %s366_s25, %s2258_s10  ;;  %p2266_p12 = scmp.lt.s32.totalorder %s366_s25, %s366_s25 }
  0x63   : > { %p3046_p8 = pneg %p3045_p7  ;;  %p2267_p0 = scmp.lt.s32.totalorder %s2258_s10, %s2258_s10 }
  0x65   : > { %p2261_p10 = pnand %p2259_p1, %p3046_p8  ;;  %p2268_p2 = por %p2267_p0, %p2266_p12 }
  0x67   : > { %p2262_p11 = pneg %p2261_p10 }
  0x69   : > { %p2269_p4 = pnand %p2268_p2, %p2262_p11 }
  0x6b   : > { %2272 = shalt.err (!%p2269_p4)
}
  0x6c   : > { %s3047_s11 = smov 8   ;;  %s3048_s12 = smov 128  }
  0x6d   : > { %2071 = dma.hbm_to_vmem [thread:$0]  (!%p3045_p7), %s2993_s4, 512, %s366_s25, [#allocation9], %s3048_s12, %s3048_s12, %s3047_s11  }
  0x6e   : > { %s2469_s5 = smov [#allocation13]   ;;  %p3049_p6 = pmov %p3046_p8 }
  0x6f   : > { %s391_s18 = sshll.u32 %s2469_s5, 4  ;;  %s392_s18 = int_to_ptr.vmem [resolvable:$true] %s391_s18 }
  0x70   : > { %s2284_s26 = scalar_lea.vmem %s392_s18, 512  ;;  %p2292_p5 = scmp.lt.s32.totalorder %s392_s18, %s392_s18 }
  0x71   : > { %p2285_p3 = scmp.ne.s32.totalorder %s392_s18, %s2284_s26  ;;  %p2293_p1 = scmp.lt.s32.totalorder %s2284_s26, %s2284_s26 }
  0x73   : > { %p2287_p9 = pnand %p2285_p3, %p3049_p6  ;;  %p2294_p8 = por %p2293_p1, %p2292_p5 }
  0x75   : > { %p2288_p2 = pneg %p2287_p9 }
  0x77   : > { %p2295_p10 = pnand %p2294_p8, %p2288_p2 }
  0x79   : > { %2298 = shalt.err (!%p2295_p10)
}
  0x7a   : > { %2077 = dma.hbm_to_vmem [thread:$0]  (!%p3045_p7), %s2995_s6, 512, %s392_s18, [#allocation12], %s3048_s12, %s3048_s12, %s3047_s11  }
  0x7b   : > { %s3050_s0 = sld [smem:[#allocation28_spill]]  ;;  %s421_s13 = scalar_lea.vmem [#allocation2], %s2644_s14 }
  0x7c   : > { %s428_s29 = sshll.u32 %s421_s13, 4  ;;  %s3051_s5 = sand.u32 1, %s2457_s23   ;;  %s429_s29 = int_to_ptr.vmem [resolvable:$true] %s428_s29 }
  0x7d   : > { %s418_s26 = scalar_lea.sflag [#allocation3], %s3051_s5  ;;  %p3052_p12 = scmp.ne.s32.totalorder %s3044_s24, 0 }
  0x81   : > { %s2718_s30 = scalar_lea.hbm %s3050_s0, %s2647_s17  ;;  %s2304_s12 = scalar_lea.hbm %s3050_s0, 256 }
  0x82   : > { %s2299_s1 = scalar_lea.hbm %s2718_s30, 128  ;;  %p2305_p7 = scmp.lt.s32.totalorder %s2718_s30, %s3050_s0 }
  0x83   : > { %p2300_p11 = scmp.ne.s32.totalorder %s2718_s30, %s2299_s1  ;;  %p2306_p3 = scmp.lt.s32.totalorder %s2304_s12, %s2299_s1 }
  0x85   : > { %p2302_p0 = pnand %p2300_p11, %p3052_p12  ;;  %p2307_p6 = por %p2306_p3, %p2305_p7 }
  0x87   : > { %p2303_p4 = pneg %p2302_p0 }
  0x89   : > { %p2308_p9 = pnand %p2307_p6, %p2303_p4 }
  0x8b   : > { %2311 = shalt.err (!%p2308_p9)
}
  0x8c   : > { %s2312_s16 = scalar_lea.vmem %s429_s29, 128  ;;  %s2470_s10 = smov [#allocation2]  }
  0x8d   : > { %p2313_p2 = scmp.ne.s32.totalorder %s429_s29, %s2312_s16  ;;  %s2317_s13 = sshll.u32 %s2470_s10, 4  ;;  %s2318_s13 = int_to_ptr.vmem [resolvable:$false] %s2317_s13 }
  0x8e   : > { %s2319_s5 = scalar_lea.vmem %s2318_s13, 256  ;;  %p2320_p8 = scmp.lt.s32.totalorder %s429_s29, %s2318_s13 }
  0x8f   : > { %p2315_p5 = pnand %p2313_p2, %p3052_p12  ;;  %p2321_p10 = scmp.lt.s32.totalorder %s2319_s5, %s2312_s16 }
  0x91   : > { %p2316_p1 = pneg %p2315_p5  ;;  %p2322_p11 = por %p2321_p10, %p2320_p8 }
  0x93   : > { %p2323_p0 = pnand %p2322_p11, %p2316_p1 }
  0x95   : > { %2326 = shalt.err (!%p2323_p0)
}
  0x96   : > { %2081 = dma.hbm_to_vmem [thread:$0]  (!%p2649_p13), %s2718_s30, 128, %s429_s29, %s418_s26  }
  0x97   : > { %s462_s11 = scalar_lea.hbm %s2991_s2, %s2647_s17  ;;  %s457_s12 = scalar_lea.vmem [#allocation7], %s2644_s14 }
  0x98   : > { %s464_s18 = sshll.u32 %s457_s12, 4  ;;  %s2327_s3 = scalar_lea.hbm %s462_s11, 128  ;;  %s465_s18 = int_to_ptr.vmem [resolvable:$true] %s464_s18 }
  0x99   : > { %p2328_p4 = scmp.ne.s32.totalorder %s462_s11, %s2327_s3  ;;  %s2332_s13 = scalar_lea.hbm %s2991_s2, 256 }
  0x9a   : > { %p2333_p6 = scmp.lt.s32.totalorder %s462_s11, %s2991_s2  ;;  %p2334_p9 = scmp.lt.s32.totalorder %s2332_s13, %s2327_s3 }
  0x9b   : > { %p2330_p7 = pnand %p2328_p4, %p3052_p12 }
  0x9c   : > { %p2335_p2 = por %p2334_p9, %p2333_p6 }
  0x9d   : > { %p2331_p3 = pneg %p2330_p7 }
  0x9f   : > { %p2336_p5 = pnand %p2335_p2, %p2331_p3 }
  0xa1   : > { %2339 = shalt.err (!%p2336_p5)
}
  0xa2   : > { %s2340_s14 = scalar_lea.vmem %s465_s18, 128  ;;  %s2471_s17 = smov [#allocation7]  }
  0xa3   : > { %p2341_p1 = scmp.ne.s32.totalorder %s465_s18, %s2340_s14  ;;  %s2345_s30 = sshll.u32 %s2471_s17, 4  ;;  %s2346_s30 = int_to_ptr.vmem [resolvable:$false] %s2345_s30 }
  0xa4   : > { %s2347_s29 = scalar_lea.vmem %s2346_s30, 256  ;;  %p2348_p11 = scmp.lt.s32.totalorder %s465_s18, %s2346_s30 }
  0xa5   : > { %p2343_p8 = pnand %p2341_p1, %p3052_p12  ;;  %p2349_p0 = scmp.lt.s32.totalorder %s2347_s29, %s2340_s14 }
  0xa7   : > { %p2344_p10 = pneg %p2343_p8  ;;  %p2350_p4 = por %p2349_p0, %p2348_p11 }
  0xa9   : > { %p2351_p7 = pnand %p2350_p4, %p2344_p10 }
  0xab   : > { %2354 = shalt.err (!%p2351_p7)
}
  0xac   : > { %2087 = dma.hbm_to_vmem [thread:$0]  (!%p2649_p13), %s462_s11, 128, %s465_s18, %s2663_s21  }
  0xad   : > { %p3053_p3 = scmp.ne.s32.totalorder %s3032_s28, 0 }
  0xae   : > { %s2760_s0 = sand.u32 (!%p3053_p3), 1, %s2453_s22   ;;  %p3054_p12 = scmp.ne.s32.totalorder (!%p3053_p3), %s3038_s19, 0 }
  0xaf   : > { %473 = sbr.rel (%p3053_p3) target bundleno = 2956 (0xb8c), region = 64  ;;  %s2763_s24 = sshll.u32 (!%p3053_p3), %s2760_s0, 3 }
  0xb0   : > { %s476_s26 = scalar_lea.sflag (!%p3053_p3), [#allocation3], %s2760_s0  ;;  %s479_s1 = scalar_lea.vmem (!%p3053_p3), [#allocation2], %s2763_s24 }
  0xb4   : > { %2424 = dma.done.wait (%p3054_p12), %s476_s26, 128  }
  0xb5   : > { %2426 = vsyncadd (%p3054_p12), %s476_s26, 4294967168  ;;  %s484_s21 = sand.u32 1, %s2568_s27   ;;  %s488_s15 = scalar_lea.vmem [#allocation5], %s2763_s24 }
  0xb6   : > { %s485_s28 = scalar_lea.sflag [#allocation6], %s484_s21 }
  0xb7   : > { %2428 = dma.done.wait (%p3054_p12), %s485_s28, 256  }
  0xb8   : > { %2430 = vsyncadd (%p3054_p12), %s485_s28, 4294967040  ;;  %s497_s25 = scalar_lea.vmem [#allocation7], %s2763_s24  ;;  %p3055_p13 = scmp.eq.s32.totalorder %s2568_s27, 0 }
  0xba   : > { %2432 = dma.done.wait (%p3055_p13), [#allocation9], 1024   ;;  %p3056_p6 = pmov %p3055_p13 }
  0xbc   : > { %2434 = vsyncadd (%p3056_p6), [#allocation9], 4294966272  ;;  %p3057_p9 = pmov %p3056_p6 }
  0xbd   : > { %p3058_p2 = pmov %p3056_p6 }
  0xbe   : > { %2436 = dma.done.wait (%p3057_p9), [#allocation12], 1024  }
  0xbf   : > { %2438 = vsyncadd (%p3058_p2), [#allocation12], 4294966272  ;;  %v2472_v0 = vmov 0.0   ;;  %vm2473_vm0 = vmmov 0   ;;  %vm581_vm1 = vcmask 261120   ;;  %v573_v1 = vld [vmem:[#allocation8 + $0x18] sm:$0xff] }
  0xc0   : > { %1955 = vmatprep.subr.mxu0 %v2472_v0  ;;  %1966 = vmatprep.subr.mxu1 %v2472_v0  ;;  %v671_v2 = vld [vmem:[#allocation10 + $0x18] sm:$0xff]  ;;  %v572_v3 = vld [vmem:[#allocation8 + $0x10] sm:$0xff]  ;;  %v571_v5 = vld [vmem:[#allocation8 + $0x8] sm:$0xff]  ;;  %vm862_vm2 = vcmask 64512   ;;  %s2474_s3 = smov 120   ;;  %s2475_s13 = smov 112  }
  0xc1   : > { %1963 = vmatprep.mubr.msk.f32.mxu0 %vm2473_vm0, %v2472_v0  ;;  %1974 = vmatprep.mubr.msk.f32.mxu1 %vm2473_vm0, %v2472_v0  ;;  %v670_v4 = vld [vmem:[#allocation10 + $0x10] sm:$0xff]  ;;  %v669_v6 = vld [vmem:[#allocation10 + $0x8] sm:$0xff]  ;;  %v570_v7 = vld [vmem:[#allocation8] sm:$0xff]  ;;  %s2476_s5 = smov 104   ;;  %s2477_s14 = smov 8   ;;  %vm1536_vm3 = vcmask 130048  }
  0xc2   : > { %1956 = vmatpush3.xpose.msk.msra.mxu0 %vm581_vm1, %v573_v1  ;;  %1967 = vmatpush3.xpose.msk.msra.mxu1 %vm581_vm1, %v671_v2  ;;  %v668_v8 = vld [vmem:[#allocation10] sm:$0xff]  ;;  %v569_v9 = vld [vmem:[%s479_s1] sm:$0xff]  ;;  %v766_v22 = vld [vmem:[#allocation11 + $0x8] sm:$0xff]  ;;  %s2478_s17 = smov 16   ;;  %s568_s30 = scalar_lea.vmem [#allocation15], %s2763_s24  ;;  %vm1538_vm4 = vcmask 195584  }
  0xc3   : > { %1957 = vmatprep.subr.mxu0 %v2472_v0  ;;  %1968 = vmatprep.subr.mxu1 %v2472_v0  ;;  %v667_v10 = vld [vmem:[%s488_s15] sm:$0xff]  ;;  %v1877_v11 = vld [vmem:[%s2996_s7] ss:$0 sm:$0xff]  ;;  %v768_v20 = vld [vmem:[#allocation11 + $0x18] sm:$0xff]  ;;  %s2479_s29 = smov 24   ;;  %s1915_s26 = sshll.u32 %s2568_s27, 7 }
  0xc4   : > { %v1883_v12 = vld [vmem:[%s2997_s8] ss:$0 sm:$0xff]  ;;  %v765_v23 = vld [vmem:[#allocation11] sm:$0xff]  ;;  %s3059_s28 = sld [smem:[#allocation34_spill]]  ;;  %s1645_s19 = scalar_lea.sflag [#allocation16], %s2760_s0 }
  0xc5   : > { %v767_v21 = vld [vmem:[#allocation11 + $0x10] sm:$0xff]  ;;  %p3060_p1 = scmp.ne.s32.totalorder %s3039_s20, 0  ;;  %s2480_s12 = smov [#allocation15]  }
  0xc6   : > { %1958 = vmatpush3.xpose.msk.msra.mxu0 %vm581_vm1, %v572_v3  ;;  %1969 = vmatpush3.xpose.msk.msra.mxu1 %vm581_vm1, %v670_v4  ;;  %v764_v24 = vld [vmem:[%s497_s25] sm:$0xff]  ;;  %s1671_s25 = sshll.u32 %s568_s30, 4  ;;  %s2359_s18 = sshll.u32 %s2480_s12, 4  ;;  %s1672_s25 = int_to_ptr.vmem [resolvable:$true] %s1671_s25  ;;  %s2360_s18 = int_to_ptr.vmem [resolvable:$false] %s2359_s18 }
  0xc7   : > { %1959 = vmatprep.subr.mxu0 %v2472_v0  ;;  %1970 = vmatprep.subr.mxu1 %v2472_v0  ;;  %v1889_v33 = vld [vmem:[%s2998_s9] ss:$0 sm:$0xff]  ;;  %s2355_s11 = scalar_lea.vmem %s1672_s25, 128  ;;  %p2362_p11 = scmp.lt.s32.totalorder %s1672_s25, %s2360_s18 }
  0xc8   : > { %p2356_p5 = scmp.ne.s32.totalorder %s1672_s25, %s2355_s11 }
  0xca   : > { %1960 = vmatpush3.xpose.msk.msra.mxu0 %vm581_vm1, %v571_v5  ;;  %1971 = vmatpush3.xpose.msk.msra.mxu1 %vm581_vm1, %v669_v6  ;;  %s1669_s15 = scalar_lea.hbm %s3059_s28, %s1915_s26  ;;  %p2357_p8 = pnand %p2356_p5, %p3060_p1 }
  0xcb   : > { %1961 = vmatprep.subr.mxu0 %v2472_v0  ;;  %1972 = vmatprep.subr.mxu1 %v2472_v0 }
  0xcc   : > { %p2358_p10 = pneg %p2357_p8 }
  0xce   : > { %1962 = vmatpush3.xpose.msk.msra.mxu0 %vm581_vm1, %v570_v7  ;;  %1973 = vmatpush3.xpose.msk.msra.mxu1 %vm581_vm1, %v668_v8 }
  0xcf   : > { %1988 = vmatprep.subr.mxu1 %v2472_v0  ;;  %1977 = vmatprep.subr.mxu0 %v2472_v0 }
  0xd1   : > { %1964 = vmatmul.mubr.msk.f32.vlgmr.msra.gmra.mxu0 %vm581_vm1, %v569_v9  ;;  %1975 = vmatmul.mubr.msk.f32.vlgmr.msra.gmra.mxu1 %vm581_vm1, %v667_v10 }
  0xd2   : > { %1990 = vmatprep.mubr.msk.f32.mxu1 %vm2473_vm0, %v2472_v0  ;;  %1985 = vmatprep.mubr.msk.f32.mxu0 %vm2473_vm0, %v2472_v0 }
  0xd3   : > { %1978 = vmatpush3.xpose.msk.msra.mxu0 %vm581_vm1, %v768_v20 }
  0xd4   : > { %1979 = vmatprep.subr.mxu0 %v2472_v0 }
  0xd7   : > { %1980 = vmatpush3.xpose.msk.msra.mxu0 %vm581_vm1, %v767_v21 }
  0xd8   : > { %1981 = vmatprep.subr.mxu0 %v2472_v0 }
  0xdb   : > { %1982 = vmatpush3.xpose.msk.msra.mxu0 %vm581_vm1, %v766_v22 }
  0xdc   : > { %1983 = vmatprep.subr.mxu0 %v2472_v0 }
  0xdf   : > { %1984 = vmatpush3.xpose.msk.msra.mxu0 %vm581_vm1, %v765_v23 }
  0xe0   : > { %2028 = vmatprep.subr.mxu0 %v2472_v0 }
  0xe2   : > { %1986 = vmatmul.mubr.msk.f32.vlgmr.msra.gmra.mxu0 %vm581_vm1, %v764_v24 }
  0xe3   : > { %2036 = vmatprep.mubr.msk.f32.mxu0 %vm2473_vm0, %v2472_v0 }
 0x191   : > { %v663_v13 = vpop.f32.mrf.mxu0  ;;  %v760_v14 = vpop.f32.mrf.mxu1 }
 0x192   : > { %v664_v15 = vadd.f32 %v1877_v11, %v663_v13  ;;  %v2824_v16 = vadd.f32 %v1883_v12, %v760_v14 }
 0x193   : > { %v1965_v17 = vpop.f32.mrf.mxu0  ;;  %v1976_v18 = vpop.f32.mrf.mxu1 }
 0x194   : > { %v2826_v19 = vmul.f32 0.35355338, %v664_v15  ;;  %1026 = vrot.lane.b32.xlu1 %v2824_v16, %s2474_s3  ;;  %1989 = vmatpush3.xpose.msk.msra.mxu1 %vm862_vm2, %v2824_v16 }
 0x195   : > { %1993 = vmatprep.subr.mxu1 %v2472_v0 }
 0x197   : > { %1991 = vmatmul.mubr.msk.f32.vlgmr.msra.gmra.mxu1 %vm862_vm2, %v2826_v19 }
 0x198   : > { %1024 = vrot.lane.b32.xlu1 %v2826_v19, %s2474_s3  ;;  %1995 = vmatprep.mubr.msk.f32.mxu1 %vm2473_vm0, %v2472_v0 }
 0x1a2   : > { %v857_v34 = vpop.f32.mrf.mxu0 }
 0x1a3   : > { %v2857_v35 = vadd.f32 %v1889_v33, %v857_v34 }
 0x1a4   : > { %v1987_v36 = vpop.f32.mrf.mxu0 }
 0x1a5   : > { %1994 = vmatpush3.msra.mxu1 %v2857_v35 }
 0x1a6   : > { %1998 = vmatprep.subr.mxu1 %v2472_v0 }
 0x206   : > { %v1027_v39 = vpop.permute.xlu1 %1026 }
 0x20a   : > { %v1025_v41 = vpop.permute.xlu1 %1024 }
 0x257   : > { %v935_v25 = vpop.f32.mrf.mxu1 }
 0x258   : > { %v939_v26 = vsel %vm862_vm2, %v935_v25, -inf }
 0x259   : > { %940 = vmax.xlane.f32.xlu0 %v939_v26  ;;  %v1992_v27 = vpop.f32.mrf.mxu1 }
 0x2e2   : > { %v941_v28 = vpop.xlane.xlu0 %940 }
 0x2e3   : > { %v942_v29 = vsub.f32 %v935_v25, %v941_v28 }
 0x2e5   : > { %v943_v30 = vmul.f32 1.442695, %v942_v29  ;;  %v1543_v29 = vld [vmem:[#allocation13 + $0x18] sm:$0xff] }
 0x2e6   : > { %2029 = vmatpush3.xpose.msk.msra.mxu0 %vm581_vm1, %v1543_v29 }
 0x2e7   : > { %2151 = vpow2.f32 %v943_v30  ;;  %2030 = vmatprep.subr.mxu0 %v2472_v0  ;;  %v1542_v30 = vld [vmem:[#allocation13 + $0x10] sm:$0xff] }
 0x2ea   : > { %2031 = vmatpush3.xpose.msk.msra.mxu0 %vm581_vm1, %v1542_v30 }
 0x2eb   : > { %2032 = vmatprep.subr.mxu0 %v2472_v0 }
 0x2f4   : > { %v2152_v31 = vpop.eup %2151 }
 0x2f5   : > { %v945_v32 = vsel %vm862_vm2, %v2152_v31, 0.0 }
 0x2f6   : > { %946 = vadd.xlane.f32.xlu0 %v945_v32  ;;  %v1540_v32 = vld [vmem:[#allocation13] sm:$0xff] }
 0x37f   : > { %v947_v37 = vpop.xlane.xlu0 %946 }
 0x380   : > { %2153 = vrcp.f32 %v947_v37 }
 0x38d   : > { %v2154_v38 = vpop.eup %2153 }
 0x38e   : > { %v2861_v40 = vmul.f32 %v2154_v38, %v2152_v31  ;;  %v1541_v31 = vld [vmem:[#allocation13 + $0x8] sm:$0xff] }
 0x38f   : > { %2033 = vmatpush3.xpose.msk.msra.mxu0 %vm581_vm1, %v1541_v31 }
 0x390   : > { %1996 = vmatmul.mubr.msk.f32.vlgmr.msra.gmra.mxu1 %vm862_vm2, %v2861_v40  ;;  %2034 = vmatprep.subr.mxu0 %v2472_v0 }
 0x391   : > { %1999 = vmatpush3.xpose.msk.msra.mxu1 %vm862_vm2, %v1027_v39  ;;  %2000 = vmatprep.mubr.msk.f32.mxu1 %vm2473_vm0, %v2472_v0 }
 0x392   : > { %2003 = vmatprep.subr.mxu1 %v2472_v0 }
 0x393   : > { %2035 = vmatpush3.xpose.msk.msra.mxu0 %vm581_vm1, %v1540_v32 }
 0x394   : > { %2001 = vmatmul.mubr.msk.f32.vlgmr.msra.gmra.mxu1 %vm862_vm2, %v1025_v41 }
 0x395   : > { %2005 = vmatprep.mubr.msk.f32.mxu1 %vm2473_vm0, %v2472_v0 }
 0x450   : > { %v2872_v42 = vpop.f32.mrf.mxu1 }
 0x452   : > { %v1997_v43 = vpop.f32.mrf.mxu1 }
 0x454   : > { %v1098_v44 = vpop.f32.mrf.mxu1 }
 0x455   : > { %v1102_v45 = vsel %vm862_vm2, %v1098_v44, -inf }
 0x456   : > { %1103 = vmax.xlane.f32.xlu0 %v1102_v45  ;;  %v2002_v46 = vpop.f32.mrf.mxu1 }
 0x46c   : > { %1115 = vrot.lane.b32.xlu0 %v2857_v35, %s2474_s3  ;;  %s2361_s3 = scalar_lea.vmem %s2360_s18, 256 }
 0x46d   : > { %p2363_p0 = scmp.lt.s32.totalorder %s2361_s3, %s2355_s11 }
 0x46f   : > { %p2364_p4 = por %p2363_p0, %p2362_p11 }
 0x470   : > { %1193 = vrot.lane.b32.xlu0 %v2824_v16, %s2475_s13 }
 0x471   : > { %p2365_p7 = pnand %p2364_p4, %p2358_p10 }
 0x474   : > { %1191 = vrot.lane.b32.xlu0 %v2826_v19, %s2475_s13 }
 0x4df   : > { %v1104_v47 = vpop.xlane.xlu0 %1103 }
 0x4e0   : > { %v1105_v48 = vsub.f32 %v1098_v44, %v1104_v47 }
 0x4e2   : > { %v1106_v49 = vmul.f32 1.442695, %v1105_v48 }
 0x4e3   : > { %v1116_v50 = vpop.permute.xlu0 %1115 }
 0x4e4   : > { %2155 = vpow2.f32 %v1106_v49  ;;  %2004 = vmatpush3.msra.mxu1 %v1116_v50 }
 0x4e5   : > { %2008 = vmatprep.subr.mxu1 %v2472_v0 }
 0x4e7   : > { %v1194_v55 = vpop.permute.xlu0 %1193 }
 0x4eb   : > { %v1192_v57 = vpop.permute.xlu0 %1191 }
 0x4f1   : > { %v2156_v51 = vpop.eup %2155 }
 0x4f2   : > { %v1108_v52 = vsel %vm862_vm2, %v2156_v51, 0.0 }
 0x4f3   : > { %1109 = vadd.xlane.f32.xlu1 %v1108_v52 }
 0x504   : > { %1281 = vrot.lane.b32.xlu1 %v2857_v35, %s2475_s13 }
 0x508   : > { %1359 = vrot.lane.b32.xlu1 %v2824_v16, %s2476_s5 }
 0x57c   : > { %v1110_v53 = vpop.xlane.xlu1 %1109 }
 0x57d   : > { %2157 = vrcp.f32 %v1110_v53 }
 0x580   : > { %v1282_v58 = vpop.permute.xlu1 %1281 }
 0x584   : > { %v1360_v6 = vpop.permute.xlu1 %1359 }
 0x58a   : > { %v2158_v54 = vpop.eup %2157 }
 0x58b   : > { %v1112_v56 = vmul.f32 %v2158_v54, %v2156_v51 }
 0x58d   : > { %2006 = vmatmul.mubr.msk.f32.vlgmr.msra.gmra.mxu1 %vm862_vm2, %v1112_v56  ;;  %v1113_v9 = vadd.f32 %v1112_v56, %v2861_v40 }
 0x58e   : > { %2009 = vmatpush3.xpose.msk.msra.mxu1 %vm862_vm2, %v1194_v55  ;;  %2010 = vmatprep.mubr.msk.f32.mxu1 %vm2473_vm0, %v2472_v0 }
 0x58f   : > { %2013 = vmatprep.subr.mxu1 %v2472_v0 }
 0x591   : > { %2011 = vmatmul.mubr.msk.f32.vlgmr.msra.gmra.mxu1 %vm862_vm2, %v1192_v57 }
 0x592   : > { %2014 = vmatpush3.msra.mxu1 %v1282_v58  ;;  %2015 = vmatprep.mubr.msk.f32.mxu1 %vm2473_vm0, %v2472_v0 }
 0x593   : > { %2018 = vmatprep.subr.mxu1 %v2472_v0 }
 0x64d   : > { %v1187_v59 = vpop.f32.mrf.mxu1 }
 0x64f   : > { %v2007_v60 = vpop.f32.mrf.mxu1 }
 0x651   : > { %v1265_v61 = vpop.f32.mrf.mxu1 }
 0x652   : > { %v1269_v62 = vsel %vm862_vm2, %v1265_v61, -inf }
 0x653   : > { %1270 = vmax.xlane.f32.xlu0 %v1269_v62  ;;  %v2012_v63 = vpop.f32.mrf.mxu1 }
 0x6dc   : > { %v1271_v1 = vpop.xlane.xlu0 %1270 }
 0x6dd   : > { %v1272_v2 = vsub.f32 %v1265_v61, %v1271_v1 }
 0x6df   : > { %v1273_v3 = vmul.f32 1.442695, %v1272_v2 }
 0x6e1   : > { %2159 = vpow2.f32 %v1273_v3 }
 0x6ee   : > { %v2160_v4 = vpop.eup %2159 }
 0x6ef   : > { %v1275_v5 = vsel %vm862_vm2, %v2160_v4, 0.0 }
 0x6f0   : > { %1276 = vadd.xlane.f32.xlu1 %v1275_v5 }
 0x701   : > { %1357 = vrot.lane.b32.xlu1 %v2826_v19, %s2476_s5 }
 0x779   : > { %v1277_v7 = vpop.xlane.xlu1 %1276 }
 0x77a   : > { %2161 = vrcp.f32 %v1277_v7 }
 0x77d   : > { %v1358_v12 = vpop.permute.xlu1 %1357 }
 0x787   : > { %v2162_v8 = vpop.eup %2161 }
 0x788   : > { %v1279_v10 = vmul.f32 %v2162_v8, %v2160_v4 }
 0x78a   : > { %v1280_v11 = vadd.f32 %v1279_v10, %v1113_v9  ;;  %2016 = vmatmul.mubr.msk.f32.vlgmr.msra.gmra.mxu1 %vm862_vm2, %v1279_v10 }
 0x78b   : > { %2019 = vmatpush3.xpose.msk.msra.mxu1 %vm862_vm2, %v1360_v6  ;;  %2020 = vmatprep.mubr.msk.f32.mxu1 %vm2473_vm0, %v2472_v0 }
 0x78c   : > { %2023 = vmatprep.subr.mxu1 %v2472_v0 }
 0x78e   : > { %2021 = vmatmul.mubr.msk.f32.vlgmr.msra.gmra.mxu1 %vm862_vm2, %v1358_v12 }
 0x78f   : > { %2025 = vmatprep.mubr.msk.f32.mxu1 %vm2473_vm0, %v2472_v0 }
 0x84a   : > { %v1353_v13 = vpop.f32.mrf.mxu1 }
 0x84c   : > { %v2017_v14 = vpop.f32.mrf.mxu1 }
 0x84e   : > { %v1431_v15 = vpop.f32.mrf.mxu1 }
 0x84f   : > { %v1435_v16 = vsel %vm862_vm2, %v1431_v15, -inf }
 0x850   : > { %1436 = vmax.xlane.f32.xlu0 %v1435_v16  ;;  %v2022_v17 = vpop.f32.mrf.mxu1 }
 0x866   : > { %1447 = vrot.lane.b32.xlu0 %v2857_v35, %s2476_s5 }
 0x86a   : > { %1524 = vrot.lane.b32.xlu0 %v1187_v59, %s2477_s14 }
 0x86e   : > { %1528 = vrot.lane.b32.xlu0 %v1353_v13, %s2478_s17 }
 0x8d9   : > { %v1437_v18 = vpop.xlane.xlu0 %1436 }
 0x8da   : > { %v1438_v19 = vsub.f32 %v1431_v15, %v1437_v18 }
 0x8dc   : > { %v1439_v20 = vmul.f32 1.442695, %v1438_v19 }
 0x8dd   : > { %v1448_v21 = vpop.permute.xlu0 %1447 }
 0x8de   : > { %2163 = vpow2.f32 %v1439_v20  ;;  %2024 = vmatpush3.msra.mxu1 %v1448_v21 }
 0x8e1   : > { %v1525_v35 = vpop.permute.xlu0 %1524 }
 0x8e2   : > { %v1535_v37 = vsel %vm862_vm2, %v2872_v42, %v1525_v35 }
 0x8e5   : > { %v1529_v36 = vpop.permute.xlu0 %1528 }
 0x8e6   : > { %v1537_v38 = vsel %vm1536_vm3, %v1535_v37, %v1529_v36 }
 0x8eb   : > { %v2164_v22 = vpop.eup %2163 }
 0x8ec   : > { %v1441_v23 = vsel %vm862_vm2, %v2164_v22, 0.0 }
 0x8ed   : > { %1442 = vadd.xlane.f32.xlu1 %v1441_v23 }
 0x976   : > { %v1443_v24 = vpop.xlane.xlu1 %1442 }
 0x977   : > { %2165 = vrcp.f32 %v1443_v24 }
 0x984   : > { %v2166_v25 = vpop.eup %2165 }
 0x985   : > { %v1445_v26 = vmul.f32 %v2166_v25, %v2164_v22 }
 0x987   : > { %v1446_v27 = vadd.f32 %v1445_v26, %v1280_v11  ;;  %2026 = vmatmul.mubr.msk.f32.vlgmr.msra.gmra.mxu1 %vm862_vm2, %v1445_v26 }
 0x989   : > { %v1637_v28 = vmul.f32 0.25, %v1446_v27 }
 0x98b   : > { %1638 = vst.msk [vmem:[%s568_s30] sm:$0xff] %vm862_vm2, %v1637_v28 }
 0xa47   : > { %v1519_v33 = vpop.f32.mrf.mxu1 }
 0xa48   : > { %1532 = vrot.lane.b32.xlu0 %v1519_v33, %s2479_s29 }
 0xa49   : > { %v2027_v34 = vpop.f32.mrf.mxu1 }
 0xaba   : > { %v1533_v0 = vpop.permute.xlu0 %1532 }
 0xabb   : > { %v1539_v39 = vsel %vm1538_vm4, %v1537_v38, %v1533_v0 }
 0xabc   : > { %2037 = vmatmul.mubr.msk.f32.vlgmr.msra.gmra.mxu0 %vm581_vm1, %v1539_v39 }
 0xabd   : > { %2368 = shalt.err (!%p2365_p7)
}
 0xabe   : > { %s2369_s16 = scalar_lea.hbm %s1669_s15, 128  ;;  %s2373_s5 = scalar_lea.hbm %s3059_s28, 256 }
 0xabf   : > { %p2370_p3 = scmp.ne.s32.totalorder %s1669_s15, %s2369_s16  ;;  %p2374_p6 = scmp.lt.s32.totalorder %s1669_s15, %s3059_s28 }
 0xac0   : > { %p2375_p9 = scmp.lt.s32.totalorder %s2373_s5, %s2369_s16 }
 0xac1   : > { %p2371_p12 = pnand %p2370_p3, %p3060_p1 }
 0xac2   : > { %p2376_p2 = por %p2375_p9, %p2374_p6 }
 0xac3   : > { %p2372_p13 = pneg %p2371_p12 }
 0xac5   : > { %p2377_p5 = pnand %p2376_p2, %p2372_p13 }
 0xac7   : > { %2380 = shalt.err (!%p2377_p5)
}
 0xac8   : > { %2062 = dma.vmem_to_hbm [thread:$0]  (%p3060_p1), %s1672_s25, 128, %s1669_s15, %s1645_s19  }
 0xac9   : > { %s3061_s1 = sld [smem:[#allocation32_spill]]  ;;  %s561_s21 = scalar_lea.vmem [#allocation14], %s2763_s24 }
 0xaca   : > { %s1658_s11 = sshll.u32 %s561_s21, 4  ;;  %s3062_s3 = sld [smem:[#allocation33_spill]]  ;;  %s1659_s11 = int_to_ptr.vmem [resolvable:$true] %s1658_s11 }
 0xacb   : > { %s1640_s10 = scalar_lea.sflag [#allocation4], %s2760_s0  ;;  %s2381_s15 = scalar_lea.vmem %s1659_s11, 128 }
 0xacc   : > { %p2382_p8 = scmp.ne.s32.totalorder %s1659_s11, %s2381_s15  ;;  %s2481_s24 = smov [#allocation14]  }
 0xacd   : > { %s2385_s25 = sshll.u32 %s2481_s24, 4  ;;  %s2386_s25 = int_to_ptr.vmem [resolvable:$false] %s2385_s25 }
 0xace   : > { %p2383_p10 = pnand %p2382_p8, %p3060_p1  ;;  %s2387_s19 = scalar_lea.vmem %s2386_s25, 256 }
 0xacf   : > { %v1907_v40 = vld [vmem:[%s3061_s1] ss:$0 sm:$0xff]  ;;  %p2388_p0 = scmp.lt.s32.totalorder %s1659_s11, %s2386_s25  ;;  %p2389_p4 = scmp.lt.s32.totalorder %s2387_s19, %s2381_s15 }
 0xad0   : > { %s2951_s16 = scalar_lea.hbm %s3062_s3, %s1915_s26  ;;  %p2384_p11 = pneg %p2383_p10 }
 0xad1   : > { %p2390_p7 = por %p2389_p4, %p2388_p0 }
 0xad3   : > { %p2391_p3 = pnand %p2390_p7, %p2384_p11 }
 0xb7c   : > { %v1632_v41 = vpop.f32.mrf.mxu0 }
 0xb7d   : > { %v1633_v42 = vadd.f32 %v1907_v40, %v1632_v41 }
 0xb7e   : > { %v2038_v43 = vpop.f32.mrf.mxu0 }
 0xb7f   : > { %1636 = vst.msk [vmem:[%s561_s21] sm:$0xff] %vm581_vm1, %v1633_v42 }
 0xb80   : > { %2394 = shalt.err (!%p2391_p3)
}
 0xb81   : > { %s2395_s27 = scalar_lea.hbm %s2951_s16, 128  ;;  %s2399_s13 = scalar_lea.hbm %s3062_s3, 256 }
 0xb82   : > { %p2396_p12 = scmp.ne.s32.totalorder %s2951_s16, %s2395_s27  ;;  %p2400_p9 = scmp.lt.s32.totalorder %s2951_s16, %s3062_s3 }
 0xb83   : > { %p2401_p2 = scmp.lt.s32.totalorder %s2399_s13, %s2395_s27 }
 0xb84   : > { %p2397_p13 = pnand %p2396_p12, %p3060_p1 }
 0xb85   : > { %p2402_p5 = por %p2401_p2, %p2400_p9 }
 0xb86   : > { %p2398_p6 = pneg %p2397_p13 }
 0xb88   : > { %p2403_p8 = pnand %p2402_p5, %p2398_p6 }
 0xb8a   : > { %2406 = shalt.err (!%p2403_p8)
}
 0xb8b   : > { %2061 = dma.vmem_to_hbm [thread:$0]  (%p3060_p1), %s1659_s11, 128, %s2951_s16, %s1640_s10  }
 0xb8c PF: > { %s3063_s17 = sld [smem:[#allocation23_spill]] }
 0xb8d   : > { %s3064_s30 = sld [smem:[#allocation27_spill]] }
 0xb8e   : > { %s3065_s29 = sld [smem:[#allocation24_spill]] }
 0xb92   : > { %s1683_s1 = sand.u32 1, %s3063_s17  }
 0xb93   : > { %p3066_p10 = scmp.ne.s32.totalorder %s3064_s30, 0  ;;  %s1684_s21 = scalar_lea.sflag [#allocation4], %s1683_s1 }
 0xb94   : > { %p3067_p11 = scmp.ge.s32.totalorder %s3065_s29, 2 }
 0xb96   : > { %p2089_p0 = pnand %p3067_p11, %p3066_p10 }
 0xb98   : > { %p2090_p4 = pneg %p2089_p0 }
 0xb9a   : > { %2440 = dma.done.wait (%p2090_p4), %s1684_s21, 128  }
 0xb9b   : > { %2442 = vsyncadd (%p2090_p4), %s1684_s21, 4294967168  ;;  %s1693_s12 = scalar_lea.sflag [#allocation16], %s1683_s1 }
 0xb9c   : > { %2444 = dma.done.wait (%p2090_p4), %s1693_s12, 128  }
 0xb9d   : > { %2446 = vsyncadd (%p2090_p4), %s1693_s12, 4294967168  ;;  %s3068_s24 = sld [smem:[#allocation25_spill]]  ;;  %s3070_s21 = smov %s2453_s22 }
 0xb9e   : > { %s3069_s20 = sld [smem:[#allocation26_spill]]  ;;  %s3071_s22 = smov %s2457_s23 }
 0xba3   : > { %p34_p1 = scmp.ge.s32.totalorder %s3068_s24, 4  }
 0xba4   : > { %s3072_s23 = smov %s3069_s20 }
 0xba5   :  { %36 = sbr.rel (!%p34_p1) target bundleno = 19 (0x13), region = 166 }
 0xbaa   :  { %1698 = vsyncpa [#allocation3], 1 }
 0xbab   :  { %1700 = vsyncpa [#allocation3 + $0x1], 1 }
 0xbac   :  { %1701 = vsyncpa [#allocation6], 1 }
 0xbad   :  { %1703 = vsyncpa [#allocation6 + $0x1], 1 }
 0xbae   :  { %1704 = vsyncpa [#allocation9], 1 }
 0xbaf   :  { %1705 = vsyncpa [#allocation12], 1 }
 0xbb0   :  { %1706 = vsyncpa [#allocation4], 1 }
 0xbb1   :  { %1708 = vsyncpa [#allocation4 + $0x1], 1 }
 0xbb2   :  { %1709 = vsyncpa [#allocation16], 1 }
 0xbb3   :  { %1711 = vsyncpa [#allocation16 + $0x1], 1 }

</bundles_post_ra>
